<compile_context>
chip_gen: v5e
topology: v5e:2x2
jax: 0.10.0
libtpu: 0.0.40
codegen_flags: <defaults>
</compile_context>

<pallas_src>
import jax
import jax.numpy as jnp
from jax.experimental import pallas as pl
from jax.experimental.pallas import tpu as pltpu


def _round_up(n, m):
    return ((n + m - 1) // m) * m


def mlp_kernel(x_ref,
               w1_ref, b1_ref,
               w2_ref, b2_ref,
               w3_ref, b3_ref,
               w4t_ref, b4_ref,
               o_ref):
    # x_ref: (2, TB)  -- batch on the lane axis
    x = x_ref[...]

    # Layer 1 (VPU): h = W1 @ x + b1, expanded as broadcast-FMAs (K=2, MXU idle otherwise)
    w1 = w1_ref[...]                                   # (10, 2)
    h = w1[:, 0:1] * x[0:1, :] + w1[:, 1:2] * x[1:2, :] + b1_ref[...]
    h = jnp.maximum(h, 0.0)                            # (10, TB)

    # Layer 2 (MXU): (10,10) @ (10,TB)
    h = jnp.dot(w2_ref[...], h, preferred_element_type=jnp.float32) + b2_ref[...]
    h = jnp.maximum(h, 0.0)                            # (10, TB)

    # Layer 3 (MXU): (10,10) @ (10,TB)
    h = jnp.dot(w3_ref[...], h, preferred_element_type=jnp.float32) + b3_ref[...]
    h = jnp.maximum(h, 0.0)                            # (10, TB)

    # Layer 4 (VPU + XLU reduce): (1,10) @ (10,TB) as mul + sublane-sum (N=1, MXU idle otherwise)
    out = jnp.sum(w4t_ref[...] * h, axis=0, keepdims=True) + b4_ref[...]
    o_ref[...] = out.astype(o_ref.dtype)               # (1, TB)


def net_forward(x, params, *, max_tile=16384):
    """x: (B, 2) float32.  params: PyTorch-convention weights (out, in), biases (out, 1)."""
    B = x.shape[0]

    # Feature-major: (2, B), pad batch (lane axis) to a multiple of the tile.
    xt = x.T
    tb = min(max_tile, _round_up(max(B, 1), 512))      # lane tile, multiple of 128
    Bp = _round_up(B, tb)
    if Bp != B:
        xt = jnp.pad(xt, ((0, 0), (0, Bp - B)))

    w1, b1 = params["w1"], params["b1"]                # (10, 2), (10, 1)
    w2, b2 = params["w2"], params["b2"]                # (10, 10), (10, 1)
    w3, b3 = params["w3"], params["b3"]                # (10, 10), (10, 1)
    w4t = params["w4"].T                               # (10, 1)
    b4 = params["b4"]                                  # (1, 1)

    def const_spec(shape):
        return pl.BlockSpec(shape, lambda i: (0, 0))

    grid = (Bp // tb,)
    out = pl.pallas_call(
        mlp_kernel,
        out_shape=jax.ShapeDtypeStruct((1, Bp), jnp.float32),
        grid=grid,
        in_specs=[
            pl.BlockSpec((2, tb), lambda i: (0, i)),   # x tile: batch on lanes
            const_spec(w1.shape), const_spec(b1.shape),
            const_spec(w2.shape), const_spec(b2.shape),
            const_spec(w3.shape), const_spec(b3.shape),
            const_spec(w4t.shape), const_spec(b4.shape),
        ],
        out_specs=pl.BlockSpec((1, tb), lambda i: (0, i)),
        compiler_params=pltpu.CompilerParams(
            dimension_semantics=("parallel",)),
    )(xt, w1, b1, w2, b2, w3, b3, w4t, b4)

    # Back to PyTorch layout (B, 1), dropping batch padding.
    return out[:, :B].T


def init_params(key):
    """Deterministic init mimicking PyTorch Linear (uniform +/- 1/sqrt(fan_in)).

    Weights stored PyTorch-style (out_features, in_features); biases (out_features, 1).
    """
    dims = [(2, 10), (10, 10), (10, 10), (10, 1)]
    params = {}
    for idx, (fan_in, fan_out) in enumerate(dims, start=1):
        key, kw, kb = jax.random.split(key, 3)
        bound = 1.0 / jnp.sqrt(float(fan_in))
        params[f"w{idx}"] = jax.random.uniform(
            kw, (fan_out, fan_in), jnp.float32, -bound, bound)
        params[f"b{idx}"] = jax.random.uniform(
            kb, (fan_out, 1), jnp.float32, -bound, bound)
    return params


def net_reference(x, params):
    """Pure-JAX reference matching the PyTorch forward (y = x @ W^T + b)."""
    h = jnp.maximum(x @ params["w1"].T + params["b1"].T, 0.0)
    h = jnp.maximum(h @ params["w2"].T + params["b2"].T, 0.0)
    h = jnp.maximum(h @ params["w3"].T + params["b3"].T, 0.0)
    return h @ params["w4"].T + params["b4"].T


if __name__ == "__main__":
    key = jax.random.PRNGKey(0)
    key, kx = jax.random.split(key)

    B = 8  # small batch for the correctness check
    x = jax.random.normal(kx, (B, 2), jnp.float32)
    params = init_params(key)

    out = net_forward(x, params)
    out = jax.block_until_ready(out)

    ref = net_reference(x, params)
    assert out.shape == (B, 1), out.shape
    assert jnp.allclose(out, ref, atol=1e-5, rtol=1e-5), "mismatch vs reference"

    print("KERNEL_OK")
</pallas_src>

<mosaic_0001>
module attributes {stable_mosaic.version = 11 : i64} {
  func.func @mlp_kernel(%arg0: i32, %arg1: memref<2x512xf32, #tpu.memory_space<vmem>>, %arg2: memref<10x2xf32, #tpu.memory_space<vmem>>, %arg3: memref<10x1xf32, #tpu.memory_space<vmem>>, %arg4: memref<10x10xf32, #tpu.memory_space<vmem>>, %arg5: memref<10x1xf32, #tpu.memory_space<vmem>>, %arg6: memref<10x10xf32, #tpu.memory_space<vmem>>, %arg7: memref<10x1xf32, #tpu.memory_space<vmem>>, %arg8: memref<10x1xf32, #tpu.memory_space<vmem>>, %arg9: memref<1x1xf32, #tpu.memory_space<vmem>>, %arg10: memref<1x512xf32, #tpu.memory_space<vmem>>) attributes {dimension_semantics = [#tpu.dimension_semantics<parallel>], iteration_bounds = array<i64: 1>, scalar_prefetch = 0 : i64, scratch_operands = 0 : i64, tpu.core_type = #tpu.core_type<tc>, window_params = [{transform_indices = @transform_0, window_bounds = array<i64: 2, 512>}, {pipeline_mode = #tpu.pipeline_mode<synchronous>, transform_indices = @transform_1, window_bounds = array<i64: 10, 2>}, {pipeline_mode = #tpu.pipeline_mode<synchronous>, transform_indices = @transform_2, window_bounds = array<i64: 10, 1>}, {pipeline_mode = #tpu.pipeline_mode<synchronous>, transform_indices = @transform_3, window_bounds = array<i64: 10, 10>}, {pipeline_mode = #tpu.pipeline_mode<synchronous>, transform_indices = @transform_4, window_bounds = array<i64: 10, 1>}, {pipeline_mode = #tpu.pipeline_mode<synchronous>, transform_indices = @transform_5, window_bounds = array<i64: 10, 10>}, {pipeline_mode = #tpu.pipeline_mode<synchronous>, transform_indices = @transform_6, window_bounds = array<i64: 10, 1>}, {pipeline_mode = #tpu.pipeline_mode<synchronous>, transform_indices = @transform_7, window_bounds = array<i64: 10, 1>}, {pipeline_mode = #tpu.pipeline_mode<synchronous>, transform_indices = @transform_8, window_bounds = array<i64: 1, 1>}, {transform_indices = @transform_9, window_bounds = array<i64: 1, 512>}]} {
    %c0 = arith.constant 0 : index
    %c0_0 = arith.constant 0 : index
    %0 = vector.load %arg1[%c0, %c0_0] : memref<2x512xf32, #tpu.memory_space<vmem>>, vector<2x512xf32>
    %c0_1 = arith.constant 0 : index
    %c0_2 = arith.constant 0 : index
    %1 = vector.load %arg2[%c0_1, %c0_2] : memref<10x2xf32, #tpu.memory_space<vmem>>, vector<10x2xf32>
    %2 = vector.extract_strided_slice %1 {offsets = [0, 0], sizes = [10, 1], strides = [1, 1]} : vector<10x2xf32> to vector<10x1xf32>
    %3 = vector.extract_strided_slice %0 {offsets = [0, 0], sizes = [1, 512], strides = [1, 1]} : vector<2x512xf32> to vector<1x512xf32>
    %4 = vector.broadcast %2 : vector<10x1xf32> to vector<10x512xf32>
    %5 = vector.broadcast %3 : vector<1x512xf32> to vector<10x512xf32>
    %6 = arith.mulf %4, %5 : vector<10x512xf32>
    %7 = vector.extract_strided_slice %1 {offsets = [0, 1], sizes = [10, 1], strides = [1, 1]} : vector<10x2xf32> to vector<10x1xf32>
    %8 = vector.extract_strided_slice %0 {offsets = [1, 0], sizes = [1, 512], strides = [1, 1]} : vector<2x512xf32> to vector<1x512xf32>
    %9 = vector.broadcast %7 : vector<10x1xf32> to vector<10x512xf32>
    %10 = vector.broadcast %8 : vector<1x512xf32> to vector<10x512xf32>
    %11 = arith.mulf %9, %10 : vector<10x512xf32>
    %12 = arith.addf %6, %11 : vector<10x512xf32>
    %c0_3 = arith.constant 0 : index
    %c0_4 = arith.constant 0 : index
    %13 = vector.load %arg3[%c0_3, %c0_4] : memref<10x1xf32, #tpu.memory_space<vmem>>, vector<10x1xf32>
    %14 = vector.broadcast %13 : vector<10x1xf32> to vector<10x512xf32>
    %15 = arith.addf %12, %14 : vector<10x512xf32>
    %cst = arith.constant 0.000000e+00 : f32
    %16 = vector.broadcast %cst : f32 to vector<10x512xf32>
    %17 = arith.maximumf %15, %16 : vector<10x512xf32>
    %c0_5 = arith.constant 0 : index
    %c0_6 = arith.constant 0 : index
    %18 = vector.load %arg4[%c0_5, %c0_6] : memref<10x10xf32, #tpu.memory_space<vmem>>, vector<10x10xf32>
    %cst_7 = arith.constant dense<0.000000e+00> : vector<10x512xf32>
    %19 = tpu.matmul %18, %17, %cst_7 {dimension_numbers = #tpu.dot_dimension_numbers<[1], [0], [0], [1], [0, 0, 1, 1], [], []>} : vector<10x10xf32>, vector<10x512xf32>, vector<10x512xf32> -> vector<10x512xf32>
    %c0_8 = arith.constant 0 : index
    %c0_9 = arith.constant 0 : index
    %20 = vector.load %arg5[%c0_8, %c0_9] : memref<10x1xf32, #tpu.memory_space<vmem>>, vector<10x1xf32>
    %21 = vector.broadcast %20 : vector<10x1xf32> to vector<10x512xf32>
    %22 = arith.addf %19, %21 : vector<10x512xf32>
    %cst_10 = arith.constant 0.000000e+00 : f32
    %23 = vector.broadcast %cst_10 : f32 to vector<10x512xf32>
    %24 = arith.maximumf %22, %23 : vector<10x512xf32>
    %c0_11 = arith.constant 0 : index
    %c0_12 = arith.constant 0 : index
    %25 = vector.load %arg6[%c0_11, %c0_12] : memref<10x10xf32, #tpu.memory_space<vmem>>, vector<10x10xf32>
    %cst_13 = arith.constant dense<0.000000e+00> : vector<10x512xf32>
    %26 = tpu.matmul %25, %24, %cst_13 {dimension_numbers = #tpu.dot_dimension_numbers<[1], [0], [0], [1], [0, 0, 1, 1], [], []>} : vector<10x10xf32>, vector<10x512xf32>, vector<10x512xf32> -> vector<10x512xf32>
    %c0_14 = arith.constant 0 : index
    %c0_15 = arith.constant 0 : index
    %27 = vector.load %arg7[%c0_14, %c0_15] : memref<10x1xf32, #tpu.memory_space<vmem>>, vector<10x1xf32>
    %28 = vector.broadcast %27 : vector<10x1xf32> to vector<10x512xf32>
    %29 = arith.addf %26, %28 : vector<10x512xf32>
    %cst_16 = arith.constant 0.000000e+00 : f32
    %30 = vector.broadcast %cst_16 : f32 to vector<10x512xf32>
    %31 = arith.maximumf %29, %30 : vector<10x512xf32>
    %c0_17 = arith.constant 0 : index
    %c0_18 = arith.constant 0 : index
    %32 = vector.load %arg8[%c0_17, %c0_18] : memref<10x1xf32, #tpu.memory_space<vmem>>, vector<10x1xf32>
    %33 = vector.broadcast %32 : vector<10x1xf32> to vector<10x512xf32>
    %34 = arith.mulf %33, %31 : vector<10x512xf32>
    %cst_19 = arith.constant dense<0.000000e+00> : vector<512xf32>
    %35 = vector.multi_reduction <add>, %34, %cst_19 [0] : vector<10x512xf32> to vector<512xf32>
    %36 = vector.shape_cast %35 : vector<512xf32> to vector<1x512xf32>
    %c0_20 = arith.constant 0 : index
    %c0_21 = arith.constant 0 : index
    %37 = vector.load %arg9[%c0_20, %c0_21] : memref<1x1xf32, #tpu.memory_space<vmem>>, vector<1x1xf32>
    %38 = vector.broadcast %37 : vector<1x1xf32> to vector<1x512xf32>
    %39 = arith.addf %36, %38 : vector<1x512xf32>
    %c0_22 = arith.constant 0 : index
    %c0_23 = arith.constant 0 : index
    %40 = vector.load %arg10[%c0_22, %c0_23] : memref<1x512xf32, #tpu.memory_space<vmem>>, vector<1x512xf32>
    tpu.vector_store %arg10[%c0_22, %c0_23], %39 {strides = array<i32>} : memref<1x512xf32, #tpu.memory_space<vmem>>, vector<1x512xf32>,
    return
  }
  func.func @transform_0(%arg0: i32) -> (i32, i32) {
    %c0_i32 = arith.constant 0 : i32
    %c0_i32_0 = arith.constant 0 : i32
    return %c0_i32, %arg0 : i32, i32
  }
  func.func @transform_1(%arg0: i32) -> (i32, i32) {
    %c0_i32 = arith.constant 0 : i32
    %c0_i32_0 = arith.constant 0 : i32
    %c0_i32_1 = arith.constant 0 : i32
    return %c0_i32, %c0_i32_0 : i32, i32
  }
  func.func @transform_2(%arg0: i32) -> (i32, i32) {
    %c0_i32 = arith.constant 0 : i32
    %c0_i32_0 = arith.constant 0 : i32
    %c0_i32_1 = arith.constant 0 : i32
    return %c0_i32, %c0_i32_0 : i32, i32
  }
  func.func @transform_3(%arg0: i32) -> (i32, i32) {
    %c0_i32 = arith.constant 0 : i32
    %c0_i32_0 = arith.constant 0 : i32
    %c0_i32_1 = arith.constant 0 : i32
    return %c0_i32, %c0_i32_0 : i32, i32
  }
  func.func @transform_4(%arg0: i32) -> (i32, i32) {
    %c0_i32 = arith.constant 0 : i32
    %c0_i32_0 = arith.constant 0 : i32
    %c0_i32_1 = arith.constant 0 : i32
    return %c0_i32, %c0_i32_0 : i32, i32
  }
  func.func @transform_5(%arg0: i32) -> (i32, i32) {
    %c0_i32 = arith.constant 0 : i32
    %c0_i32_0 = arith.constant 0 : i32
    %c0_i32_1 = arith.constant 0 : i32
    return %c0_i32, %c0_i32_0 : i32, i32
  }
  func.func @transform_6(%arg0: i32) -> (i32, i32) {
    %c0_i32 = arith.constant 0 : i32
    %c0_i32_0 = arith.constant 0 : i32
    %c0_i32_1 = arith.constant 0 : i32
    return %c0_i32, %c0_i32_0 : i32, i32
  }
  func.func @transform_7(%arg0: i32) -> (i32, i32) {
    %c0_i32 = arith.constant 0 : i32
    %c0_i32_0 = arith.constant 0 : i32
    %c0_i32_1 = arith.constant 0 : i32
    return %c0_i32, %c0_i32_0 : i32, i32
  }
  func.func @transform_8(%arg0: i32) -> (i32, i32) {
    %c0_i32 = arith.constant 0 : i32
    %c0_i32_0 = arith.constant 0 : i32
    %c0_i32_1 = arith.constant 0 : i32
    return %c0_i32, %c0_i32_0 : i32, i32
  }
  func.func @transform_9(%arg0: i32) -> (i32, i32) {
    %c0_i32 = arith.constant 0 : i32
    %c0_i32_0 = arith.constant 0 : i32
    return %c0_i32, %arg0 : i32, i32
  }
}

</mosaic_0001>

<bundles_post_ra>
// kernel: tpu_custom_call.1
= control target key start
LH: loop header
LB: loop body
LE: loop exit
PB: predicated region body
PF: predicated region fallthrough
CT: control target
= control target key end

     0   :  { %s689_s0 = inlined_call_operand.vmem [shape: f32[2,512], index: 0, kind: input, shape index: {}]   ;;  %s690_s1 = inlined_call_operand.vmem [shape: f32[10,2], index: 1, kind: input, shape index: {}]   ;;  %s691_s2 = inlined_call_operand.vmem [shape: f32[10,1], index: 2, kind: input, shape index: {}]   ;;  %s692_s3 = inlined_call_operand.vmem [shape: f32[10,10], index: 3, kind: input, shape index: {}]   ;;  %s693_s4 = inlined_call_operand.vmem [shape: f32[10,1], index: 4, kind: input, shape index: {}]   ;;  %s694_s5 = inlined_call_operand.vmem [shape: f32[10,10], index: 5, kind: input, shape index: {}]   ;;  %s695_s6 = inlined_call_operand.vmem [shape: f32[10,1], index: 6, kind: input, shape index: {}]   ;;  %s696_s7 = inlined_call_operand.vmem [shape: f32[10,1], index: 7, kind: input, shape index: {}]   ;;  %s697_s8 = inlined_call_operand.<no memory space> [shape: f32[1,1], index: 8, kind: input, shape index: {}]   ;;  %s698_s9 = inlined_call_operand.hbm [shape: f32[1,512], index: 9, kind: output, shape index: {}]  }
   0x1   :  { %v14_v0 = vstv %s697_s8 }
   0x2   :  { %15 = vst [vmem:[#allocation2] sm:$0x1] %v14_v0 }
   0x3   :  { %v106_v1 = vld [vmem:[%s691_s2 + $0x8] sm:$0x3]  ;;  %v36_v3 = vld [vmem:[%s690_s1] sm:$0xff]  ;;  %v556_v4 = vmov 0  }
   0x4   :  { %v37_v2 = vld [vmem:[%s690_s1 + $0x8] sm:$0x3]  ;;  %527 = vset.pattern.permute.xlu2 %v556_v4  ;;  %525 = vset.pattern.permute.xlu1 %v556_v4 }
   0x5   :  { %523 = vset.pattern.permute.xlu0 %v556_v4  ;;  %114 = vperm.xlu2 %527, %v106_v1  }
   0x6   :  { %16 = vsyncpa [#allocation4], 0  ;;  %45 = vperm.xlu0 %523, %v37_v2   ;;  %40 = vperm.xlu1 %525, %v36_v3   ;;  %v105_v5 = vld [vmem:[%s691_s2] sm:$0xff]  ;;  %v557_v6 = vmov 1   ;;  %v400_v8 = vld [vmem:[%s696_s7 + $0x8] sm:$0x3] }
   0x7   :  { %v135_v7 = vld [vmem:[%s693_s4] sm:$0xff]  ;;  %v136_v11 = vld [vmem:[%s693_s4 + $0x8] sm:$0x3]  ;;  %vm154_vm0 = vcmask 1041408   ;;  %vm147_vm1 = vcmask 80896   ;;  %vm469_vm2 = vcmask 1040384  }
   0x8   :  { %v35_v10 = vld [vmem:[%s689_s0] sm:$0xff]  ;;  %vm471_vm3 = vcmask 1042434   ;;  %s487_s15 = sshll.u32 %s698_s9, 4  ;;  %s488_s15 = int_to_ptr.hbm [resolvable:$true] %s487_s15 }
   0x9   :  { %v451_v9 = vld [vmem:[#allocation2] sm:$0x1]  ;;  %v49_v13 = vperm.slane %v35_v10, 0  ;;  %v50_v14 = vperm.slane %v35_v10, 2  ;;  %v51_v15 = vperm.slane %v35_v10, 4  ;;  %v52_v16 = vperm.slane %v35_v10, 6 }
   0xa   :  { %v77_v18 = vperm.slane %v35_v10, 1  ;;  %v78_v19 = vperm.slane %v35_v10, 3  ;;  %v79_v20 = vperm.slane %v35_v10, 5  ;;  %v80_v21 = vperm.slane %v35_v10, 7  ;;  %v269_v27 = vld [vmem:[%s695_s6] sm:$0xff] }
   0xb   :  { %v57_v23 = vperm.slane %v49_v13, 0  ;;  %v58_v24 = vperm.slane %v50_v14, 0  ;;  %v59_v25 = vperm.slane %v51_v15, 0  ;;  %v60_v26 = vperm.slane %v52_v16, 0  ;;  %v399_v58 = vld [vmem:[%s696_s7] sm:$0xff] }
   0xc   :  { %v85_v28 = vperm.slane %v77_v18, 1  ;;  %v86_v29 = vperm.slane %v78_v19, 1  ;;  %v87_v30 = vperm.slane %v79_v20, 1  ;;  %v88_v31 = vperm.slane %v80_v21, 1  ;;  %v134_v13 = vld [vmem:[%s692_s3 + $0x8] sm:$0x3] }
   0xd   :  { %109 = vperm.xlu2 %527, %v105_v5   ;;  %v270_v14 = vld [vmem:[%s695_s6 + $0x8] sm:$0x3] }
   0xe   :  { %524 = vset.pattern.permute.xlu0 %v557_v6  ;;  %526 = vset.pattern.permute.xlu1 %v557_v6 }
   0xf   :  { %74 = vperm.xlu0 %524, %v37_v2   ;;  %70 = vperm.xlu1 %526, %v36_v3  }
  0x15   :  { %139 = vperm.xlu2 %527, %v135_v7  }
  0x17   :  { %528 = vset.pattern.permute.xlu1 %v556_v4  ;;  %529 = vset.pattern.permute.xlu0 %v556_v4 }
  0x18   :  { %144 = vperm.xlu1 %528, %v136_v11   ;;  %278 = vperm.xlu0 %529, %v270_v14  }
  0x1d   :  { %408 = vperm.xlu2 %527, %v400_v8  }
  0x20   :  { %273 = vperm.xlu1 %528, %v269_v27  }
  0x25   :  { %454 = vperm.xlu2 %527, %v451_v9  }
  0x28   :  { %403 = vperm.xlu1 %528, %v399_v58  }
  0x5f   :  { %v115_v22 = vpop.permute.xlu2 %114 }
  0x67   :  { %v110_v59 = vpop.permute.xlu2 %109 }
  0x78   :  { %v46_v12 = vpop.permute.xlu0 %45  ;;  %v41_v17 = vpop.permute.xlu1 %40 }
  0x79   :  { %v65_v32 = vmul.f32 %v57_v23, %v46_v12  ;;  %v66_v33 = vmul.f32 %v58_v24, %v46_v12  ;;  %v67_v34 = vmul.f32 %v59_v25, %v46_v12  ;;  %v68_v35 = vmul.f32 %v60_v26, %v46_v12  ;;  %v133_v12 = vld [vmem:[%s692_s3] sm:$0xff] }
  0x7a   :  { %v61_v36 = vmul.f32 %v57_v23, %v41_v17  ;;  %v62_v37 = vmul.f32 %v58_v24, %v41_v17  ;;  %v63_v38 = vmul.f32 %v59_v25, %v41_v17  ;;  %v64_v39 = vmul.f32 %v60_v26, %v41_v17  ;;  %v140_v17 = vpop.permute.xlu2 %139 }
  0x81   :  { %v75_v40 = vpop.permute.xlu0 %74  ;;  %v71_v41 = vpop.permute.xlu1 %70 }
  0x82   :  { %v93_v42 = vmul.f32 %v85_v28, %v75_v40  ;;  %v94_v43 = vmul.f32 %v86_v29, %v75_v40  ;;  %v95_v44 = vmul.f32 %v87_v30, %v75_v40  ;;  %v96_v45 = vmul.f32 %v88_v31, %v75_v40 }
  0x83   :  { %v89_v46 = vmul.f32 %v85_v28, %v71_v41  ;;  %v90_v47 = vmul.f32 %v86_v29, %v71_v41  ;;  %v91_v48 = vmul.f32 %v87_v30, %v71_v41  ;;  %v92_v49 = vmul.f32 %v88_v31, %v71_v41  ;;  %v267_v31 = vld [vmem:[%s694_s5] sm:$0xff] }
  0x84   :  { %v101_v50 = vadd.f32 %v93_v42, %v65_v32  ;;  %v102_v51 = vadd.f32 %v94_v43, %v66_v33  ;;  %v103_v52 = vadd.f32 %v95_v44, %v67_v34  ;;  %v104_v53 = vadd.f32 %v96_v45, %v68_v35  ;;  %v268_v42 = vld [vmem:[%s694_s5 + $0x8] sm:$0x3]  ;;  %s558_s5 = smov [#allocation3]  }
  0x85   :  { %v97_v54 = vadd.f32 %v89_v46, %v61_v36  ;;  %v98_v55 = vadd.f32 %v90_v47, %v62_v37  ;;  %v99_v56 = vadd.f32 %v91_v48, %v63_v38  ;;  %v100_v57 = vadd.f32 %v92_v49, %v64_v39  ;;  %s485_s12 = sshll.u32 %s558_s5, 4  ;;  %s486_s12 = int_to_ptr.vmem [resolvable:$true] %s485_s12 }
  0x86   :  { %v121_v60 = vadd.f32 %v115_v22, %v101_v50  ;;  %v122_v61 = vadd.f32 %v115_v22, %v102_v51  ;;  %v123_v62 = vadd.f32 %v115_v22, %v103_v52  ;;  %v124_v63 = vadd.f32 %v115_v22, %v104_v53 }
  0x87   :  { %v117_v0 = vadd.f32 %v110_v59, %v97_v54  ;;  %v118_v1 = vadd.f32 %v110_v59, %v98_v55  ;;  %v119_v2 = vadd.f32 %v110_v59, %v99_v56  ;;  %v120_v3 = vadd.f32 %v110_v59, %v100_v57  ;;  %v409_v57 = vpop.permute.xlu2 %408 }
  0x88   :  { %v129_v4 = vmax.f32 %v121_v60, 0.0  ;;  %v130_v5 = vmax.f32 %v122_v61, 0.0  ;;  %v131_v6 = vmax.f32 %v123_v62, 0.0  ;;  %v132_v7 = vmax.f32 %v124_v63, 0.0 }
  0x89   :  { %v125_v8 = vmax.f32 %v117_v0, 0.0  ;;  %v126_v9 = vmax.f32 %v118_v1, 0.0  ;;  %v127_v10 = vmax.f32 %v119_v2, 0.0  ;;  %v128_v11 = vmax.f32 %v120_v3, 0.0 }
  0x8a   :  { %496 = vmatpush.msk.msra.mxu0 %vm154_vm0, %v129_v4  ;;  %499 = vmatpush.msk.msra.mxu1 %vm154_vm0, %v130_v5  ;;  %v145_v18 = vpop.permute.xlu1 %144  ;;  %v279_v47 = vpop.permute.xlu0 %278 }
  0x8b   :  { %502 = vmatpush.msk.msra.mxu2 %vm154_vm0, %v131_v6  ;;  %505 = vmatpush.msk.msra.mxu3 %vm154_vm0, %v132_v7 }
  0x8c   :  { %182 = vmatpush.msra.mxu0 %v125_v8  ;;  %205 = vmatpush.msra.mxu1 %v126_v9 }
  0x8d   :  { %228 = vmatpush.msra.mxu2 %v127_v10  ;;  %251 = vmatpush.msra.mxu3 %v128_v11 }
  0x8e   :  { %497 = vmatmul.msk.f32.vlgmr.msra.gmra.mxu0 %vm147_vm1, %v133_v12  ;;  %500 = vmatmul.msk.f32.vlgmr.msra.gmra.mxu1 %vm147_vm1, %v133_v12 }
  0x8f   :  { %503 = vmatmul.msk.f32.vlgmr.msra.gmra.mxu2 %vm147_vm1, %v133_v12  ;;  %506 = vmatmul.msk.f32.vlgmr.msra.gmra.mxu3 %vm147_vm1, %v133_v12 }
  0x92   :  { %v274_v45 = vpop.permute.xlu1 %273 }
  0x96   :  { %498 = vmatmul.msk.f32.gmra.mxu0 %vm147_vm1, %v134_v13  ;;  %501 = vmatmul.msk.f32.gmra.mxu1 %vm147_vm1, %v134_v13 }
  0x97   :  { %504 = vmatmul.msk.f32.gmra.mxu2 %vm147_vm1, %v134_v13  ;;  %507 = vmatmul.msk.f32.gmra.mxu3 %vm147_vm1, %v134_v13 }
  0x9a   :  { %v404_v58 = vpop.permute.xlu1 %403 }
 0x10b   :  { %v184_v15 = vpop.f32.mrf.mxu0  ;;  %v207_v16 = vpop.f32.mrf.mxu1 }
 0x10c   :  { %v185_v23 = vadd.f32 %v184_v15, %v140_v17  ;;  %v208_v24 = vadd.f32 %v207_v16, %v140_v17 }
 0x10e   :  { %v259_v29 = vmax.f32 %v185_v23, 0.0  ;;  %v260_v30 = vmax.f32 %v208_v24, 0.0 }
 0x112   :  { %v230_v19 = vpop.f32.mrf.mxu2  ;;  %v253_v20 = vpop.f32.mrf.mxu3 }
 0x113   :  { %v187_v21 = vpop.f32.mrf.mxu0  ;;  %v210_v22 = vpop.f32.mrf.mxu1  ;;  %v231_v32 = vadd.f32 %v230_v19, %v140_v17  ;;  %v254_v35 = vadd.f32 %v253_v20, %v140_v17 }
 0x114   :  { %v188_v25 = vadd.f32 %v187_v21, %v145_v18  ;;  %v211_v26 = vadd.f32 %v210_v22, %v145_v18 }
 0x115   :  { %v261_v40 = vmax.f32 %v231_v32, 0.0  ;;  %v262_v41 = vmax.f32 %v254_v35, 0.0 }
 0x116   :  { %v263_v27 = vmax.f32 %v188_v25, 0.0  ;;  %v264_v28 = vmax.f32 %v211_v26, 0.0 }
 0x118   :  { %508 = vmatpush.msk.msrb.mxu0 %vm154_vm0, %v263_v27  ;;  %511 = vmatpush.msk.msrb.mxu1 %vm154_vm0, %v264_v28 }
 0x11a   :  { %v233_v33 = vpop.f32.mrf.mxu2  ;;  %v256_v34 = vpop.f32.mrf.mxu3  ;;  %314 = vmatpush.msrb.mxu0 %v259_v29  ;;  %337 = vmatpush.msrb.mxu1 %v260_v30 }
 0x11b   :  { %v234_v36 = vadd.f32 %v233_v33, %v145_v18  ;;  %v257_v37 = vadd.f32 %v256_v34, %v145_v18  ;;  %509 = vmatmul.msk.f32.vlgmr.msrb.gmra.mxu0 %vm147_vm1, %v267_v31  ;;  %512 = vmatmul.msk.f32.vlgmr.msrb.gmra.mxu1 %vm147_vm1, %v267_v31 }
 0x11d   :  { %v265_v38 = vmax.f32 %v234_v36, 0.0  ;;  %v266_v39 = vmax.f32 %v257_v37, 0.0  ;;  %v455_v36 = vpop.permute.xlu2 %454 }
 0x11f   :  { %514 = vmatpush.msk.msrb.mxu2 %vm154_vm0, %v265_v38  ;;  %517 = vmatpush.msk.msrb.mxu3 %vm154_vm0, %v266_v39 }
 0x121   :  { %360 = vmatpush.msrb.mxu2 %v261_v40  ;;  %383 = vmatpush.msrb.mxu3 %v262_v41  ;;  %v457_v40 = vperm.slane %v455_v36, 0 }
 0x122   :  { %515 = vmatmul.msk.f32.vlgmr.msrb.gmra.mxu2 %vm147_vm1, %v267_v31  ;;  %518 = vmatmul.msk.f32.vlgmr.msrb.gmra.mxu3 %vm147_vm1, %v267_v31 }
 0x123   :  { %510 = vmatmul.msk.f32.gmra.mxu0 %vm147_vm1, %v268_v42  ;;  %513 = vmatmul.msk.f32.gmra.mxu1 %vm147_vm1, %v268_v42 }
 0x12a   :  { %516 = vmatmul.msk.f32.gmra.mxu2 %vm147_vm1, %v268_v42  ;;  %519 = vmatmul.msk.f32.gmra.mxu3 %vm147_vm1, %v268_v42 }
 0x198   :  { %v316_v43 = vpop.f32.mrf.mxu0  ;;  %v339_v44 = vpop.f32.mrf.mxu1 }
 0x199   :  { %v340_v46 = vadd.f32 %v339_v44, %v274_v45  ;;  %v317_v48 = vadd.f32 %v316_v43, %v274_v45 }
 0x19b   :  { %v392_v53 = vmax.f32 %v340_v46, 0.0  ;;  %v391_v54 = vmax.f32 %v317_v48, 0.0 }
 0x19d   :  { %v412_v63 = vmul.f32 %v404_v58, %v392_v53  ;;  %v411_v0 = vmul.f32 %v404_v58, %v391_v54 }
 0x1a0   :  { %v319_v49 = vpop.f32.mrf.mxu0  ;;  %v342_v50 = vpop.f32.mrf.mxu1 }
 0x1a1   :  { %v320_v51 = vadd.f32 %v319_v49, %v279_v47  ;;  %v343_v52 = vadd.f32 %v342_v50, %v279_v47  ;;  %v475_v50 = vlaneseq }
 0x1a3   :  { %v395_v55 = vmax.f32 %v320_v51, 0.0  ;;  %v396_v56 = vmax.f32 %v343_v52, 0.0  ;;  %vm477_vm4 = vcmp.lt.s32.totalorder %v475_v50, 512 }
 0x1a5   :  { %v415_v59 = vmul.f32 %v409_v57, %v395_v55  ;;  %v416_v60 = vmul.f32 %v409_v57, %v396_v56  ;;  %v362_v61 = vpop.f32.mrf.mxu2  ;;  %v385_v62 = vpop.f32.mrf.mxu3 }
 0x1a6   :  { %v363_v6 = vadd.f32 %v362_v61, %v274_v45  ;;  %v386_v7 = vadd.f32 %v385_v62, %v274_v45 }
 0x1a7   :  { %v419_v1 = vsel %vm154_vm0, %v415_v59, 0.0  ;;  %v427_v2 = vsel %vm154_vm0, %v416_v60, 0.0 }
 0x1a8   :  { %v428_v3 = vadd.f32 %v427_v2, %v412_v63  ;;  %v420_v4 = vadd.f32 %v419_v1, %v411_v0  ;;  %v393_v15 = vmax.f32 %v363_v6, 0.0  ;;  %v394_v16 = vmax.f32 %v386_v7, 0.0 }
 0x1aa   :  { %v429_v5 = vrot.slane %v428_v3, 4  ;;  %v421_v9 = vrot.slane %v420_v4, 4  ;;  %v413_v23 = vmul.f32 %v404_v58, %v393_v15  ;;  %v414_v24 = vmul.f32 %v404_v58, %v394_v16 }
 0x1ac   :  { %v430_v8 = vadd.f32 %v429_v5, %v428_v3  ;;  %v422_v19 = vadd.f32 %v421_v9, %v420_v4 }
 0x1ad   :  { %v365_v10 = vpop.f32.mrf.mxu2  ;;  %v388_v11 = vpop.f32.mrf.mxu3 }
 0x1ae   :  { %v366_v12 = vadd.f32 %v365_v10, %v279_v47  ;;  %v389_v13 = vadd.f32 %v388_v11, %v279_v47  ;;  %v431_v14 = vrot.slane %v430_v8, 2  ;;  %v423_v27 = vrot.slane %v422_v19, 2 }
 0x1b0   :  { %v397_v17 = vmax.f32 %v366_v12, 0.0  ;;  %v398_v18 = vmax.f32 %v389_v13, 0.0  ;;  %v432_v22 = vadd.f32 %v431_v14, %v430_v8  ;;  %v424_v33 = vadd.f32 %v423_v27, %v422_v19 }
 0x1b2   :  { %v417_v20 = vmul.f32 %v409_v57, %v397_v17  ;;  %v418_v21 = vmul.f32 %v409_v57, %v398_v18  ;;  %v433_v30 = vrot.slane %v432_v22, 1  ;;  %v425_v41 = vrot.slane %v424_v33, 1 }
 0x1b4   :  { %v435_v25 = vsel %vm154_vm0, %v417_v20, 0.0  ;;  %v443_v26 = vsel %vm154_vm0, %v418_v21, 0.0  ;;  %v434_v37 = vadd.f32 %v433_v30, %v432_v22  ;;  %v426_v47 = vadd.f32 %v425_v41, %v424_v33 }
 0x1b5   :  { %v436_v28 = vadd.f32 %v435_v25, %v413_v23  ;;  %v444_v29 = vadd.f32 %v443_v26, %v414_v24 }
 0x1b6   :  { %v459_v46 = vadd.f32 %v457_v40, %v434_v37  ;;  %v458_v54 = vadd.f32 %v457_v40, %v426_v47 }
 0x1b7   :  { %v437_v31 = vrot.slane %v436_v28, 4  ;;  %v445_v32 = vrot.slane %v444_v29, 4 }
 0x1b8   :  { %v466_v53 = vrot.slane %v459_v46, 7 }
 0x1b9   :  { %v438_v34 = vadd.f32 %v437_v31, %v436_v28  ;;  %v446_v35 = vadd.f32 %v445_v32, %v444_v29 }
 0x1ba   :  { %v470_v57 = vsel %vm469_vm2, %v458_v54, %v466_v53 }
 0x1bb   :  { %v439_v38 = vrot.slane %v438_v34, 2  ;;  %v447_v39 = vrot.slane %v446_v35, 2 }
 0x1bd   :  { %v440_v42 = vadd.f32 %v439_v38, %v438_v34  ;;  %v448_v43 = vadd.f32 %v447_v39, %v446_v35 }
 0x1bf   :  { %v441_v44 = vrot.slane %v440_v42, 1  ;;  %v449_v45 = vrot.slane %v448_v43, 1 }
 0x1c1   :  { %v442_v48 = vadd.f32 %v441_v44, %v440_v42  ;;  %v450_v49 = vadd.f32 %v449_v45, %v448_v43 }
 0x1c3   :  { %v460_v51 = vadd.f32 %v457_v40, %v442_v48  ;;  %v461_v52 = vadd.f32 %v457_v40, %v450_v49 }
 0x1c5   :  { %v467_v55 = vrot.slane %v460_v51, 6  ;;  %v468_v56 = vrot.slane %v461_v52, 5 }
 0x1c7   :  { %v472_v58 = vsel %vm471_vm3, %v467_v55, %v468_v56 }
 0x1c8   :  { %v473_v59 = vsel %vm154_vm0, %v470_v57, %v472_v58 }
 0x1c9   :  { %479 = vst.msk [vmem:[#allocation3] sm:$0xf] %vm477_vm4, %v473_v59 }
 0x1ca   :  { %490 = dma.vmem_to_hbm [thread:$0]  %s486_s12, 64, %s488_s15, [#allocation4]  }
 0x1cb   :  { %554 = dma.done.wait [#allocation4], 64  }
 0x1cc   :  { %555 = vsyncadd [#allocation4], 4294967232 }
 0x1cd   :  { %495 = vsyncpa [#allocation4], 1 }

</bundles_post_ra>
